<compile_context>
chip_gen: v7x
topology: tpu7x:2x2x1
jax: 0.10.0
libtpu: 0.0.40
codegen_flags: <defaults>
</compile_context>

<pallas_src>
import functools
import math

import jax
import jax.numpy as jnp
from jax.experimental import pallas as pl
from jax.experimental.pallas import tpu as pltpu

_HIDDEN = 256


def _round_up(n, m):
    return ((n + m - 1) // m) * m


@functools.lru_cache(maxsize=1)
def _tpu_generation():
    """Best-effort TPU generation (4/5/6/7); 0 if unknown."""
    try:
        kind = jax.devices()[0].device_kind.lower()
    except Exception:
        return 0
    for g in (7, 6, 5, 4):
        if f"v{g}" in kind or f"tpu{g}" in kind:
            return g
    return 0


def _value_net_kernel(x_ref, w1_ref, b1_ref, w2_ref, b2_ref, w3_ref, b3_ref,
                      o_ref, *, bf16_epilogue):
    # Layers 1 & 2 on the MXU: bf16 operands, f32 accumulation.
    x = x_ref[...].astype(jnp.bfloat16)
    h1 = jnp.dot(x, w1_ref[...], preferred_element_type=jnp.float32)
    if bf16_epilogue:
        # v6e/v7x have bf16 VPU lanes: halve the epilogue's vector work (h1 is
        # needed in bf16 for the next matmul anyway).
        h1 = jnp.maximum(h1.astype(jnp.bfloat16) + b1_ref[...].astype(jnp.bfloat16),
                         0.0)
    else:
        # v5e: no bf16 VALU -> keep the epilogue in f32, cast afterwards.
        h1 = jnp.maximum(h1 + b1_ref[...], 0.0).astype(jnp.bfloat16)
    h2 = jnp.dot(h1, w2_ref[...], preferred_element_type=jnp.float32)
    h2 = jnp.maximum(h2 + b2_ref[...], 0.0)            # f32 epilogue (precision)

    # Layer 3 (256 -> 1): compute w3 @ h2^T on the MXU so the per-tile result is
    # a lane-dense (1, block_b) row (avoids masked 1-lane stores). f32 operands
    # keep the final contraction at full precision; the MXU has huge slack here.
    out_row = jax.lax.dot_general(
        w3_ref[...], h2,
        dimension_numbers=(((1,), (1,)), ((), ())),
        preferred_element_type=jnp.float32)             # (1, block_b)
    o_ref[...] = (out_row + b3_ref[...]).astype(o_ref.dtype)


def prepare_value_network_params(params):
    """One-time conversion of params into the kernel's layout/dtypes.

    Hoists the bf16 weight casts and row reshapes out of the per-call path.
    """
    w1, b1, w2, b2, w3, b3 = params
    H = w1.shape[1]
    return (
        jnp.asarray(w1, jnp.bfloat16),                  # (D, H)  bf16
        jnp.asarray(b1, jnp.float32).reshape(1, H),     # (1, H)  f32
        jnp.asarray(w2, jnp.bfloat16),                  # (H, H)  bf16
        jnp.asarray(b2, jnp.float32).reshape(1, H),     # (1, H)  f32
        jnp.asarray(w3, jnp.float32).reshape(1, H),     # (1, H)  f32 row
        jnp.asarray(b3, jnp.float32).reshape(1, 1),     # (1, 1)  f32
    )


@functools.partial(jax.jit, static_argnames=("block_b",))
def value_network_forward(x, prepared_params, block_b=1024):
    """x: (B, input_dim) f32 -> (B, 1) f32."""
    w1, b1, w2, b2, w3, b3 = prepared_params
    B, D = x.shape
    H = w1.shape[1]
    gen = _tpu_generation()

    # --- batch tile selection -----------------------------------------------
    block_b_eff = _round_up(min(block_b, _round_up(B, 8)), 8)
    # Only v7x has 2 TensorCores: split a single full-batch tile in two so both
    # cores get work.  On 1-TC parts (v5e/v6e) this would only add grid steps.
    if gen >= 7 and B >= 512 and pl.cdiv(B, block_b_eff) == 1:
        block_b_eff = _round_up(pl.cdiv(B, 2), 8)

    # VMEM clamp: keep (double-buffered x tile + f32/bf16 intermediates +
    # resident weights) under a conservative per-generation budget so a large
    # input_dim or block_b can never exceed the scoped VMEM limit.
    vmem_budget = (40 << 20) if (gen >= 7 or gen == 0) else (80 << 20)
    fixed_bytes = 4 * (D * H + H * H) + (64 << 10)       # 2x-buffered bf16 weights
    per_row_bytes = 2 * D * 4 + D * 2 + 8 * H * 4 + 16   # x bufs + bf16 copy + h1/h2
    max_rows = max(8, ((vmem_budget - fixed_bytes) // per_row_bytes) // 8 * 8)
    block_b_eff = min(block_b_eff, max_rows)

    num_tiles = pl.cdiv(B, block_b_eff)
    kernel = functools.partial(_value_net_kernel, bf16_epilogue=(gen >= 6))

    out = pl.pallas_call(
        kernel,
        out_shape=jax.ShapeDtypeStruct((num_tiles, 1, block_b_eff), jnp.float32),
        grid_spec=pltpu.PrefetchScalarGridSpec(
            num_scalar_prefetch=0,
            grid=(num_tiles,),
            in_specs=[
                pl.BlockSpec((block_b_eff, D), lambda i: (i, 0)),   # x tile
                pl.BlockSpec((D, H), lambda i: (0, 0)),             # w1 (bf16)
                pl.BlockSpec((1, H), lambda i: (0, 0)),             # b1
                pl.BlockSpec((H, H), lambda i: (0, 0)),             # w2 (bf16)
                pl.BlockSpec((1, H), lambda i: (0, 0)),             # b2
                pl.BlockSpec((1, H), lambda i: (0, 0)),             # w3 row
                pl.BlockSpec((1, 1), lambda i: (0, 0)),             # b3
            ],
            # Lane-dense output: one (1, block_b) row per tile.
            out_specs=pl.BlockSpec((None, 1, block_b_eff), lambda i: (i, 0, 0)),
        ),
        compiler_params=pltpu.CompilerParams(
            dimension_semantics=("parallel",),
            vmem_limit_bytes=(48 << 20) if (gen >= 7 or gen == 0) else (96 << 20),
        ),
    )(x, w1, b1, w2, b2, w3, b3)

    # (num_tiles, 1, block_b) row-major -> flat batch order; drop padded tail.
    return out.reshape(-1)[:B].reshape(B, 1)


def init_value_network_params(key, input_dim, hidden=_HIDDEN):
    """Deterministic init mirroring nn.Linear's U(-1/sqrt(fan_in), 1/sqrt(fan_in))."""
    keys = jax.random.split(key, 6)

    def linear(kw, kb, fan_in, fan_out):
        bound = 1.0 / math.sqrt(fan_in)
        w = jax.random.uniform(kw, (fan_in, fan_out), jnp.float32, -bound, bound)
        b = jax.random.uniform(kb, (1, fan_out), jnp.float32, -bound, bound)
        return w, b

    w1, b1 = linear(keys[0], keys[1], input_dim, hidden)
    w2, b2 = linear(keys[2], keys[3], hidden, hidden)
    w3, b3 = linear(keys[4], keys[5], hidden, 1)
    return (w1, b1, w2, b2, w3, b3)


def _reference_forward(x, params):
    # Pure f32 reference (the kernel uses bf16 MXU operands -> loosened tol).
    w1, b1, w2, b2, w3, b3 = params
    h1 = jnp.maximum(x @ w1 + b1, 0.0)
    h2 = jnp.maximum(h1 @ w2 + b2, 0.0)
    return h2 @ w3 + b3


if __name__ == "__main__":
    key = jax.random.PRNGKey(0)
    k_x, k_p, k_x2 = jax.random.split(key, 3)

    batch, input_dim = 8, 32
    x = jax.random.normal(k_x, (batch, input_dim), jnp.float32)
    params = init_value_network_params(k_p, input_dim)
    kparams = prepare_value_network_params(params)     # one-time weight prep

    out = jax.block_until_ready(value_network_forward(x, kparams))
    ref = _reference_forward(x, params)
    assert out.shape == (batch, 1), out.shape
    assert jnp.allclose(out, ref, atol=3e-2, rtol=3e-2), (
        float(jnp.max(jnp.abs(out - ref))))

    # Second check: multi-tile grid with a batch that is not a multiple of the
    # tile (exercises the lane-dense output layout and padded-tail slicing).
    batch2 = 24
    x2 = jax.random.normal(k_x2, (batch2, input_dim), jnp.float32)
    out2 = jax.block_until_ready(value_network_forward(x2, kparams, block_b=16))
    ref2 = _reference_forward(x2, params)
    assert out2.shape == (batch2, 1), out2.shape
    assert jnp.allclose(out2, ref2, atol=3e-2, rtol=3e-2), (
        float(jnp.max(jnp.abs(out2 - ref2))))

    print("KERNEL_OK")
</pallas_src>

<mosaic_0001>
module attributes {stable_mosaic.version = 11 : i64} {
  func.func @_value_net_kernel(%arg0: i32, %arg1: memref<8x32xf32, #tpu.memory_space<vmem>>, %arg2: memref<32x256xbf16, #tpu.memory_space<vmem>>, %arg3: memref<1x256xf32, #tpu.memory_space<vmem>>, %arg4: memref<256x256xbf16, #tpu.memory_space<vmem>>, %arg5: memref<1x256xf32, #tpu.memory_space<vmem>>, %arg6: memref<1x256xf32, #tpu.memory_space<vmem>>, %arg7: memref<1x1xf32, #tpu.memory_space<vmem>>, %arg8: memref<1x1x8xf32, #tpu.memory_space<vmem>>) attributes {dimension_semantics = [#tpu.dimension_semantics<parallel>], iteration_bounds = array<i64: 1>, scalar_prefetch = 0 : i64, scratch_operands = 0 : i64, tpu.core_type = #tpu.core_type<tc>, window_params = [{transform_indices = @transform_0, window_bounds = array<i64: 8, 32>}, {pipeline_mode = #tpu.pipeline_mode<synchronous>, transform_indices = @transform_1, window_bounds = array<i64: 32, 256>}, {pipeline_mode = #tpu.pipeline_mode<synchronous>, transform_indices = @transform_2, window_bounds = array<i64: 1, 256>}, {pipeline_mode = #tpu.pipeline_mode<synchronous>, transform_indices = @transform_3, window_bounds = array<i64: 256, 256>}, {pipeline_mode = #tpu.pipeline_mode<synchronous>, transform_indices = @transform_4, window_bounds = array<i64: 1, 256>}, {pipeline_mode = #tpu.pipeline_mode<synchronous>, transform_indices = @transform_5, window_bounds = array<i64: 1, 256>}, {pipeline_mode = #tpu.pipeline_mode<synchronous>, transform_indices = @transform_6, window_bounds = array<i64: 1, 1>}, {transform_indices = @transform_7, window_bounds = array<i64: 1, 1, 8>}]} {
    %c0 = arith.constant 0 : index
    %c0_0 = arith.constant 0 : index
    %0 = vector.load %arg1[%c0, %c0_0] : memref<8x32xf32, #tpu.memory_space<vmem>>, vector<8x32xf32>
    %1 = arith.truncf %0 : vector<8x32xf32> to vector<8x32xbf16>
    %c0_1 = arith.constant 0 : index
    %c0_2 = arith.constant 0 : index
    %2 = vector.load %arg2[%c0_1, %c0_2] : memref<32x256xbf16, #tpu.memory_space<vmem>>, vector<32x256xbf16>
    %cst = arith.constant dense<0.000000e+00> : vector<8x256xf32>
    %3 = tpu.matmul %1, %2, %cst {dimension_numbers = #tpu.dot_dimension_numbers<[1], [0], [0], [1], [0, 0, 1, 1], [], []>} : vector<8x32xbf16>, vector<32x256xbf16>, vector<8x256xf32> -> vector<8x256xf32>
    %c0_3 = arith.constant 0 : index
    %c0_4 = arith.constant 0 : index
    %4 = vector.load %arg3[%c0_3, %c0_4] : memref<1x256xf32, #tpu.memory_space<vmem>>, vector<1x256xf32>
    %5 = vector.broadcast %4 : vector<1x256xf32> to vector<8x256xf32>
    %6 = arith.addf %3, %5 : vector<8x256xf32>
    %cst_5 = arith.constant 0.000000e+00 : f32
    %7 = vector.broadcast %cst_5 : f32 to vector<8x256xf32>
    %8 = arith.maximumf %6, %7 : vector<8x256xf32>
    %9 = arith.truncf %8 : vector<8x256xf32> to vector<8x256xbf16>
    %c0_6 = arith.constant 0 : index
    %c0_7 = arith.constant 0 : index
    %10 = vector.load %arg4[%c0_6, %c0_7] : memref<256x256xbf16, #tpu.memory_space<vmem>>, vector<256x256xbf16>
    %cst_8 = arith.constant dense<0.000000e+00> : vector<8x256xf32>
    %11 = tpu.matmul %9, %10, %cst_8 {dimension_numbers = #tpu.dot_dimension_numbers<[1], [0], [0], [1], [0, 0, 1, 1], [], []>} : vector<8x256xbf16>, vector<256x256xbf16>, vector<8x256xf32> -> vector<8x256xf32>
    %c0_9 = arith.constant 0 : index
    %c0_10 = arith.constant 0 : index
    %12 = vector.load %arg5[%c0_9, %c0_10] : memref<1x256xf32, #tpu.memory_space<vmem>>, vector<1x256xf32>
    %13 = vector.broadcast %12 : vector<1x256xf32> to vector<8x256xf32>
    %14 = arith.addf %11, %13 : vector<8x256xf32>
    %cst_11 = arith.constant 0.000000e+00 : f32
    %15 = vector.broadcast %cst_11 : f32 to vector<8x256xf32>
    %16 = arith.maximumf %14, %15 : vector<8x256xf32>
    %c0_12 = arith.constant 0 : index
    %c0_13 = arith.constant 0 : index
    %17 = vector.load %arg6[%c0_12, %c0_13] : memref<1x256xf32, #tpu.memory_space<vmem>>, vector<1x256xf32>
    %cst_14 = arith.constant dense<0.000000e+00> : vector<1x8xf32>
    %18 = tpu.matmul %17, %16, %cst_14 {dimension_numbers = #tpu.dot_dimension_numbers<[1], [1], [0], [0], [0, 0, 1, 0], [], []>} : vector<1x256xf32>, vector<8x256xf32>, vector<1x8xf32> -> vector<1x8xf32>
    %c0_15 = arith.constant 0 : index
    %c0_16 = arith.constant 0 : index
    %19 = vector.load %arg7[%c0_15, %c0_16] : memref<1x1xf32, #tpu.memory_space<vmem>>, vector<1x1xf32>
    %20 = vector.broadcast %19 : vector<1x1xf32> to vector<1x8xf32>
    %21 = arith.addf %18, %20 : vector<1x8xf32>
    %c0_17 = arith.constant 0 : index
    %c0_18 = arith.constant 0 : index
    %c0_19 = arith.constant 0 : index
    %22 = vector.load %arg8[%c0_17, %c0_18, %c0_19] : memref<1x1x8xf32, #tpu.memory_space<vmem>>, vector<1x1x8xf32>
    %23 = vector.shape_cast %22 : vector<1x1x8xf32> to vector<1x8xf32>
    %24 = vector.shape_cast %21 : vector<1x8xf32> to vector<1x1x8xf32>
    tpu.vector_store %arg8[%c0_17, %c0_18, %c0_19], %24 {strides = array<i32>} : memref<1x1x8xf32, #tpu.memory_space<vmem>>, vector<1x1x8xf32>,
    return
  }
  func.func @transform_0(%arg0: i32) -> (i32, i32) {
    %c0_i32 = arith.constant 0 : i32
    %c0_i32_0 = arith.constant 0 : i32
    return %arg0, %c0_i32 : i32, i32
  }
  func.func @transform_1(%arg0: i32) -> (i32, i32) {
    %c0_i32 = arith.constant 0 : i32
    %c0_i32_0 = arith.constant 0 : i32
    %c0_i32_1 = arith.constant 0 : i32
    return %c0_i32, %c0_i32_0 : i32, i32
  }
  func.func @transform_2(%arg0: i32) -> (i32, i32) {
    %c0_i32 = arith.constant 0 : i32
    %c0_i32_0 = arith.constant 0 : i32
    %c0_i32_1 = arith.constant 0 : i32
    return %c0_i32, %c0_i32_0 : i32, i32
  }
  func.func @transform_3(%arg0: i32) -> (i32, i32) {
    %c0_i32 = arith.constant 0 : i32
    %c0_i32_0 = arith.constant 0 : i32
    %c0_i32_1 = arith.constant 0 : i32
    return %c0_i32, %c0_i32_0 : i32, i32
  }
  func.func @transform_4(%arg0: i32) -> (i32, i32) {
    %c0_i32 = arith.constant 0 : i32
    %c0_i32_0 = arith.constant 0 : i32
    %c0_i32_1 = arith.constant 0 : i32
    return %c0_i32, %c0_i32_0 : i32, i32
  }
  func.func @transform_5(%arg0: i32) -> (i32, i32) {
    %c0_i32 = arith.constant 0 : i32
    %c0_i32_0 = arith.constant 0 : i32
    %c0_i32_1 = arith.constant 0 : i32
    return %c0_i32, %c0_i32_0 : i32, i32
  }
  func.func @transform_6(%arg0: i32) -> (i32, i32) {
    %c0_i32 = arith.constant 0 : i32
    %c0_i32_0 = arith.constant 0 : i32
    %c0_i32_1 = arith.constant 0 : i32
    return %c0_i32, %c0_i32_0 : i32, i32
  }
  func.func @transform_7(%arg0: i32) -> (i32, i32, i32) {
    %c0_i32 = arith.constant 0 : i32
    %c0_i32_0 = arith.constant 0 : i32
    %c0_i32_1 = arith.constant 0 : i32
    return %arg0, %c0_i32, %c0_i32_0 : i32, i32, i32
  }
}

</mosaic_0001>

<bundles_post_ra>
// kernel: value_network_forward.1
= control target key start
LH: loop header
LB: loop body
LE: loop exit
PB: predicated region body
PF: predicated region fallthrough
CT: control target
= control target key end

     0   :  { %s819_s0 = inlined_call_operand.hbm [shape: f32[8,32], index: 0, kind: input, shape index: {}]   ;;  %s820_s1 = inlined_call_operand.hbm [shape: bf16[32,256], index: 1, kind: input, shape index: {}]   ;;  %s821_s2 = inlined_call_operand.vmem [shape: f32[1,256], index: 2, kind: input, shape index: {}]   ;;  %s822_s3 = inlined_call_operand.hbm [shape: bf16[256,256], index: 3, kind: input, shape index: {}]   ;;  %s823_s4 = inlined_call_operand.vmem [shape: f32[1,256], index: 4, kind: input, shape index: {}]   ;;  %s824_s5 = inlined_call_operand.vmem [shape: f32[1,256], index: 5, kind: input, shape index: {}]   ;;  %s825_s6 = inlined_call_operand.<no memory space> [shape: f32[1,1], index: 6, kind: input, shape index: {}]   ;;  %s826_s7 = inlined_call_operand.hbm [shape: f32[1,1,8], index: 7, kind: output, shape index: {}]  }
   0x1   :  { %v12_v0 = vstv %s825_s6 }
   0x2   :  { %13 = vst [vmem:[#allocation2] sm:$0x1] %v12_v0 }
   0x3   :  { %14 = vsyncpa [#allocation4], 0 }
   0x4   :  { %15 = vsyncpa [#allocation7], 0 }
   0x5   :  { %16 = vsyncpa [#allocation5], 0  ;;  %s706_s26 = smov [#allocation6]   ;;  %s612_s30 = scalar_lea.hbm %s820_s1, 512 }
   0x6   :  { %s32_s27 = sshll.u32 %s706_s26, 4  ;;  %p613_p0 = scmp.ne.s32.totalorder %s820_s1, %s612_s30  ;;  %s33_s27 = int_to_ptr.vmem [resolvable:$true] %s32_s27 }
   0x7   :  { %p616_p1 = scmp.lt.u32.totalorder %s612_s30, %s820_s1 }
   0x9   :  { %p618_p2 = pnand %p616_p1, %p613_p0 }
   0xb   :  { %621 = shalt.err (!%p618_p2)
}
   0xc   :  { %s622_s6 = scalar_lea.vmem %s33_s27, 512  ;;  %p627_p4 = scmp.lt.s32.totalorder %s33_s27, %s33_s27 }
   0xd   :  { %p623_p3 = scmp.ne.s32.totalorder %s33_s27, %s622_s6  ;;  %p628_p5 = scmp.lt.s32.totalorder %s622_s6, %s622_s6 }
   0xf   :  { %p629_p6 = por %p628_p5, %p627_p4 }
  0x11   :  { %p630_p7 = pnand %p629_p6, %p623_p3 }
  0x13   :  { %633 = shalt.err (!%p630_p7)
}
  0x14   :  { %s707_s12 = smov 128   ;;  %s708_s13 = smov 8  }
  0x15   :  { %38 = dma.hbm_to_vmem [thread:$0]  %s820_s1, 512, %s33_s27, [#allocation7], %s707_s12, %s707_s12, %s708_s13  }
  0x16   :  { %s709_s16 = smov [#allocation3]   ;;  %s710_s18 = smov [#allocation8]  }
  0x17   :  { %s23_s17 = sshll.u32 %s709_s16, 4  ;;  %s46_s19 = sshll.u32 %s710_s18, 4  ;;  %s24_s17 = int_to_ptr.vmem [resolvable:$true] %s23_s17  ;;  %s47_s19 = int_to_ptr.vmem [resolvable:$true] %s46_s19 }
  0x18   :  { %s634_s22 = scalar_lea.hbm %s819_s0, 128 }
  0x19   :  { %p635_p8 = scmp.ne.s32.totalorder %s819_s0, %s634_s22  ;;  %p638_p9 = scmp.lt.u32.totalorder %s634_s22, %s819_s0 }
  0x1b   :  { %p640_p10 = pnand %p638_p9, %p635_p8 }
  0x1d   :  { %643 = shalt.err (!%p640_p10)
}
  0x1e   :  { %s644_s1 = scalar_lea.vmem %s24_s17, 128  ;;  %p649_p12 = scmp.lt.s32.totalorder %s24_s17, %s24_s17 }
  0x1f   :  { %p645_p11 = scmp.ne.s32.totalorder %s24_s17, %s644_s1  ;;  %p650_p13 = scmp.lt.s32.totalorder %s644_s1, %s644_s1 }
  0x21   :  { %p651_p0 = por %p650_p13, %p649_p12 }
  0x23   :  { %p652_p1 = pnand %p651_p0, %p645_p11 }
  0x25   :  { %655 = shalt.err (!%p652_p1)
}
  0x26   :  { %26 = dma.hbm_to_vmem [thread:$0]  %s819_s0, 128, %s24_s17, [#allocation4]  }
  0x27   :  { %s656_s8 = scalar_lea.hbm %s822_s3, 4096 }
  0x28   :  { %p657_p2 = scmp.ne.s32.totalorder %s822_s3, %s656_s8  ;;  %p660_p3 = scmp.lt.u32.totalorder %s656_s8, %s822_s3 }
  0x2a   :  { %p662_p4 = pnand %p660_p3, %p657_p2 }
  0x2c   :  { %665 = shalt.err (!%p662_p4)
}
  0x2d   :  { %s666_s14 = scalar_lea.vmem %s47_s19, 4096  ;;  %p671_p6 = scmp.lt.s32.totalorder %s47_s19, %s47_s19 }
  0x2e   :  { %p667_p5 = scmp.ne.s32.totalorder %s47_s19, %s666_s14  ;;  %p672_p7 = scmp.lt.s32.totalorder %s666_s14, %s666_s14 }
  0x30   :  { %p673_p8 = por %p672_p7, %p671_p6 }
  0x32   :  { %p674_p9 = pnand %p673_p8, %p667_p5 }
  0x34   :  { %677 = shalt.err (!%p674_p9)
}
  0x35   :  { %52 = dma.hbm_to_vmem [thread:$0]  %s822_s3, 4096, %s47_s19, [#allocation7], %s707_s12, %s707_s12, %s708_s13  }
  0x36   :  { %700 = dma.done.wait [#allocation4], 128  }
  0x37   :  { %701 = vsyncadd [#allocation4], 4294967168 }
  0x38   :  { %702 = dma.done.wait [#allocation7], 4608  }
  0x39   :  { %703 = vsyncadd [#allocation7], 4294962688  ;;  %v711_v1 = vmov 0   ;;  %v558_v2 = vld [vmem:[#allocation6 + $0x4] ss:$8 sps:$4 sm:$0xff]   ;;  %v69_v6 = vld [vmem:[#allocation3] sm:$0xff]  ;;  %v77_v40 = vlaneseq }
  0x3a   :  { %143 = vmatprep.mubr.bf16.mxu0 %v711_v1  ;;  %557 = vset.pattern.permute.xlu0 %v711_v1  ;;  %v560_v3 = vld [vmem:[#allocation6] ss:$8 sps:$4 sm:$0xff]   ;;  %v561_v4 = vld [vmem:[#allocation6 + $0x14] ss:$8 sps:$4 sm:$0xff]   ;;  %v563_v5 = vld [vmem:[#allocation6 + $0x10] ss:$8 sps:$4 sm:$0xff]   ;;  %v70_v10 = vpack.c.bf16 %v69_v6, %v69_v6 }
  0x3b   :  { %111 = vmatprep.subr.bf16.mxu0 %v558_v2  ;;  %v564_v7 = vld [vmem:[#allocation8 + $0x4] ss:$8 sps:$4 sm:$0xff]   ;;  %v566_v8 = vld [vmem:[#allocation8] ss:$8 sps:$4 sm:$0xff]   ;;  %v567_v9 = vld [vmem:[#allocation8 + $0x14] ss:$8 sps:$4 sm:$0xff]  }
  0x3c   :  { %112 = vmatpush1.bf16.msra.mxu0 %v560_v3  ;;  %360 = vmatprep.subr.bf16.mxu1 %v564_v7  ;;  %v569_v11 = vld [vmem:[#allocation8 + $0x10] ss:$8 sps:$4 sm:$0xff]   ;;  %vm107_vm0 = vcmask 261120   ;;  %v570_v12 = vld [vmem:[#allocation8 + $0x24] ss:$8 sps:$4 sm:$0xff]   ;;  %v78_v41 = vshrl.u32 %v77_v40, 7 }
  0x3d   :  { %113 = vmatprep.subr.bf16.mxu0 %v561_v4  ;;  %361 = vmatpush1.bf16.msra.mxu1 %v566_v8  ;;  %v572_v13 = vld [vmem:[#allocation8 + $0x20] ss:$8 sps:$4 sm:$0xff]   ;;  %v573_v14 = vld [vmem:[#allocation8 + $0x34] ss:$8 sps:$4 sm:$0xff]   ;;  %v575_v15 = vld [vmem:[#allocation8 + $0x30] ss:$8 sps:$4 sm:$0xff]  }
  0x3e   :  { %362 = vmatprep.subr.bf16.mxu1 %v567_v9  ;;  %v576_v16 = vld [vmem:[#allocation8 + $0x44] ss:$8 sps:$4 sm:$0xff]   ;;  %v578_v17 = vld [vmem:[#allocation8 + $0x40] ss:$8 sps:$4 sm:$0xff]   ;;  %v579_v18 = vld [vmem:[#allocation8 + $0x54] ss:$8 sps:$4 sm:$0xff]  }
  0x3f   :  { %v581_v19 = vld [vmem:[#allocation8 + $0x50] ss:$8 sps:$4 sm:$0xff]   ;;  %v582_v20 = vld [vmem:[#allocation8 + $0x64] ss:$8 sps:$4 sm:$0xff]   ;;  %v584_v21 = vld [vmem:[#allocation8 + $0x60] ss:$8 sps:$4 sm:$0xff]  }
  0x40   :  { %114 = vmatpush1.bf16.msra.mxu0 %v563_v5  ;;  %v585_v22 = vld [vmem:[#allocation8 + $0x74] ss:$8 sps:$4 sm:$0xff]   ;;  %v587_v23 = vld [vmem:[#allocation8 + $0x70] ss:$8 sps:$4 sm:$0xff]   ;;  %v588_v24 = vld [vmem:[#allocation8 + $0x84] ss:$8 sps:$4 sm:$0xff]  }
  0x41   :  { %363 = vmatpush1.bf16.msra.mxu1 %v569_v11  ;;  %v590_v25 = vld [vmem:[#allocation8 + $0x80] ss:$8 sps:$4 sm:$0xff]   ;;  %v591_v26 = vld [vmem:[#allocation8 + $0x94] ss:$8 sps:$4 sm:$0xff]   ;;  %v593_v27 = vld [vmem:[#allocation8 + $0x90] ss:$8 sps:$4 sm:$0xff]  }
  0x42   :  { %364 = vmatprep.subr.bf16.mxu1 %v570_v12  ;;  %v594_v28 = vld [vmem:[#allocation8 + $0xa4] ss:$8 sps:$4 sm:$0xff]   ;;  %v596_v29 = vld [vmem:[#allocation8 + $0xa0] ss:$8 sps:$4 sm:$0xff]   ;;  %v597_v30 = vld [vmem:[#allocation8 + $0xb4] ss:$8 sps:$4 sm:$0xff]  }
  0x43   :  { %517 = vmatmul.mubr.msk.bf16.vlgmr.msra.gmra.mrb[0].mxu0 %vm107_vm0, %v70_v10  ;;  %v599_v31 = vld [vmem:[#allocation8 + $0xb0] ss:$8 sps:$4 sm:$0xff]   ;;  %v600_v32 = vld [vmem:[#allocation8 + $0xc4] ss:$8 sps:$4 sm:$0xff]   ;;  %v602_v33 = vld [vmem:[#allocation8 + $0xc0] ss:$8 sps:$4 sm:$0xff]  }
  0x44   :  { %v603_v34 = vld [vmem:[#allocation8 + $0xd4] ss:$8 sps:$4 sm:$0xff]   ;;  %v605_v35 = vld [vmem:[#allocation8 + $0xd0] ss:$8 sps:$4 sm:$0xff]   ;;  %v606_v36 = vld [vmem:[#allocation8 + $0xe4] ss:$8 sps:$4 sm:$0xff]  }
  0x45   :  { %365 = vmatpush1.bf16.msra.mxu1 %v572_v13  ;;  %v608_v37 = vld [vmem:[#allocation8 + $0xe0] ss:$8 sps:$4 sm:$0xff]   ;;  %v609_v38 = vld [vmem:[#allocation8 + $0xf4] ss:$8 sps:$4 sm:$0xff]   ;;  %v611_v39 = vld [vmem:[#allocation8 + $0xf0] ss:$8 sps:$4 sm:$0xff]  }
  0x46   :  { %366 = vmatprep.subr.bf16.mxu1 %v573_v14  ;;  %v79_v42 = vsub.s32 0, %v78_v41  ;;  %v75_v43 = vld [vmem:[%s821_s2] sm:$0x3]  ;;  %v83_v44 = vsub.s32 1, %v78_v41  ;;  %vm495_vm1 = vcmask 57344  }
  0x47   :  { %v403_v57 = vld [vmem:[%s824_s5] sm:$0x3]  ;;  %s712_s5 = smov [#allocation9]  }
  0x48   :  { %v80_v45 = vrot.slane %v75_v43, %v79_v42  ;;  %v84_v46 = vrot.slane %v75_v43, %v83_v44  ;;  %v422_v58 = vrot.slane %v403_v57, %v83_v44  ;;  %v404_v59 = vld [vmem:[#allocation2] sm:$0x1]  ;;  %v418_v7 = vrot.slane %v403_v57, %v79_v42  ;;  %s503_s18 = sshll.u32 %s712_s5, 4  ;;  %s504_s18 = int_to_ptr.vmem [resolvable:$true] %s503_s18 }
  0x49   :  { %367 = vmatpush1.bf16.msra.mxu1 %v575_v15  ;;  %407 = vperm.xlu0 %557, %v404_v59   ;;  %v188_v60 = vld [vmem:[%s823_s4] sm:$0x3]  ;;  %s678_s4 = scalar_lea.vmem %s504_s18, 16  ;;  %s682_s19 = scalar_lea.vmem %s504_s18, 32 }
  0x4a   :  { %368 = vmatprep.subr.bf16.mxu1 %v576_v16  ;;  %489 = vmatprep.mubr.f32.mxu0 %v422_v58  ;;  %v193_v61 = vrot.slane %v188_v60, %v79_v42  ;;  %v197_v62 = vrot.slane %v188_v60, %v83_v44  ;;  %p679_p10 = scmp.ne.s32.totalorder %s504_s18, %s678_s4  ;;  %p683_p11 = scmp.lt.s32.totalorder %s504_s18, %s504_s18 }
  0x4b   :  { %p684_p12 = scmp.lt.s32.totalorder %s682_s19, %s678_s4 }
  0x4d   :  { %369 = vmatpush1.bf16.msra.mxu1 %v578_v17  ;;  %p685_p13 = por %p684_p12, %p683_p11 }
  0x4e   :  { %370 = vmatprep.subr.bf16.mxu1 %v579_v18 }
  0x4f   :  { %p686_p0 = pnand %p685_p13, %p679_p10 }
  0x51   :  { %371 = vmatpush1.bf16.msra.mxu1 %v581_v19 }
  0x52   :  { %372 = vmatprep.subr.bf16.mxu1 %v582_v20 }
  0x55   :  { %373 = vmatpush1.bf16.msra.mxu1 %v584_v21 }
  0x56   :  { %374 = vmatprep.subr.bf16.mxu1 %v585_v22 }
  0x59   :  { %375 = vmatpush1.bf16.msra.mxu1 %v587_v23 }
  0x5a   :  { %376 = vmatprep.subr.bf16.mxu1 %v588_v24 }
  0x5d   :  { %377 = vmatpush1.bf16.msra.mxu1 %v590_v25 }
  0x5e   :  { %378 = vmatprep.subr.bf16.mxu1 %v591_v26 }
  0x61   :  { %379 = vmatpush1.bf16.msra.mxu1 %v593_v27 }
  0x62   :  { %380 = vmatprep.subr.bf16.mxu1 %v594_v28 }
  0x65   :  { %381 = vmatpush1.bf16.msra.mxu1 %v596_v29 }
  0x66   :  { %382 = vmatprep.subr.bf16.mxu1 %v597_v30 }
  0x69   :  { %383 = vmatpush1.bf16.msra.mxu1 %v599_v31 }
  0x6a   :  { %384 = vmatprep.subr.bf16.mxu1 %v600_v32 }
  0x6d   :  { %385 = vmatpush1.bf16.msra.mxu1 %v602_v33 }
  0x6e   :  { %386 = vmatprep.subr.bf16.mxu1 %v603_v34 }
  0x71   :  { %387 = vmatpush1.bf16.msra.mxu1 %v605_v35 }
  0x72   :  { %388 = vmatprep.subr.bf16.mxu1 %v606_v36 }
  0x75   :  { %389 = vmatpush1.bf16.msra.mxu1 %v608_v37 }
  0x76   :  { %390 = vmatprep.subr.bf16.mxu1 %v609_v38 }
  0x79   :  { %391 = vmatpush1.bf16.msra.mxu1 %v611_v39 }
  0xc8   :  { %v408_v8 = vpop.permute.xlu0 %407 }
  0xc9   :  { %v413_v9 = vrot.slane %v408_v8, %v79_v42 }
 0x116   :  { %v145_v47 = vpop.f32.mrb[0].mxu0 }
 0x117   :  { %v146_v48 = vadd.f32 %v145_v47, %v80_v45  ;;  %v147_v49 = vpop.f32.mrb[1].mxu0 }
 0x118   :  { %v148_v50 = vadd.f32 %v147_v49, %v84_v46  ;;  %v149_v51 = vpop.f32.mrb[2].mxu0 }
 0x119   :  { %v152_v52 = vmax.f32 %v146_v48, 0.0  ;;  %v150_v53 = vpop.f32.mrb[3].mxu0 }
 0x11a   :  { %v153_v54 = vmax.f32 %v148_v50, 0.0 }
 0x11b   :  { %v154_v56 = vpack.c.bf16 %v152_v52, %v152_v52 }
 0x11c   :  { %v155_v55 = vpack.c.bf16 %v153_v54, %v153_v54 }
 0x11e   :  { %392 = vmatprep.mubr.bf16.mxu1 %v155_v55 }
 0x11f   :  { %393 = vmatmul.mubr.bf16.vlgmr.msra.gmra.mrb[0].mxu1 %v154_v56 }
 0x1f2   :  { %v394_v63 = vpop.f32.mrb[0].mxu1 }
 0x1f3   :  { %v395_v0 = vadd.f32 %v394_v63, %v193_v61  ;;  %v396_v1 = vpop.f32.mrb[1].mxu1 }
 0x1f4   :  { %v397_v2 = vadd.f32 %v396_v1, %v197_v62  ;;  %v398_v3 = vpop.f32.mrb[2].mxu1 }
 0x1f5   :  { %v399_v4 = vpop.f32.mrb[3].mxu1  ;;  %v401_v6 = vmax.f32 %v395_v0, 0.0 }
 0x1f6   :  { %v402_v5 = vmax.f32 %v397_v2, 0.0 }
 0x1f8   :  { %425 = vmatprep.subr.mxu0 %v402_v5 }
 0x1f9   :  { %426 = vmatpush1.xpose.msra.mxu0 %v401_v6 }
 0x1fc   :  { %490 = vmatmul.mubr.f32.vlgmr.msra.gmra.mrb[4].mxu0 %v418_v7 }
 0x2cf   :  { %v491_v10 = vpop.f32.mrb[4].mxu0 }
 0x2d0   :  { %v492_v11 = vadd.f32 %v491_v10, %v413_v9  ;;  %v493_v12 = vpop.f32.mrb[5].mxu0 }
 0x2d2   :  { %496 = vst.msk [vmem:[#allocation9] sm:$0x1] %vm495_vm1, %v492_v11 }
 0x2d3   :  { %689 = shalt.err (!%p686_p0)
}
 0x2d4   :  { %s690_s22 = scalar_lea.hbm %s826_s7, 16 }
 0x2d5   :  { %p691_p1 = scmp.ne.s32.totalorder %s826_s7, %s690_s22  ;;  %p694_p2 = scmp.lt.u32.totalorder %s690_s22, %s826_s7 }
 0x2d7   :  { %p696_p3 = pnand %p694_p2, %p691_p1 }
 0x2d9   :  { %699 = shalt.err (!%p696_p3)
}
 0x2da   :  { %506 = dma.vmem_to_hbm [thread:$0]  %s504_s18, 16, %s826_s7, [#allocation5]  }
 0x2db   :  { %704 = dma.done.wait [#allocation5], 16  }
 0x2dc   :  { %705 = vsyncadd [#allocation5], 4294967280 }
 0x2dd   :  { %510 = vsyncpa [#allocation4], 1 }
 0x2de   :  { %511 = vsyncpa [#allocation7], 1 }
 0x2df   :  { %512 = vsyncpa [#allocation5], 1 }

</bundles_post_ra>
